<compile_context>
chip_gen: v7x
topology: tpu7x:2x2x1
jax: 0.10.0
libtpu: 0.0.40
codegen_flags: <defaults>
</compile_context>

<pallas_src>
import functools
import math

import jax
import jax.numpy as jnp
from jax import lax
from jax.experimental import pallas as pl
from jax.experimental.pallas import tpu as pltpu


_MASK_VALUE = -1e30                    # finite large-negative: keeps max/exp finite
_VMEM_LIMIT = 32 * 1024 * 1024         # explicit scoped-VMEM budget (safe on v5e/v6e/v7x)


def _round_up(x, m):
    return ((x + m - 1) // m) * m


def _tile_and_pad(dim, prefs, align):
    """Pick (tile, padded_dim) for `dim`.

    * If a preferred tile divides `dim` evenly, use it (no padding).
    * If `dim` is smaller than the lane/sublane alignment, a whole-axis block
      is layout-legal — use it as-is.
    * Otherwise pad `dim` up to an aligned single block (small dims) or to a
      multiple of the preferred tile that minimizes padding (large dims).
    Never falls back to a huge full-dim block for large ragged dims.
    """
    for p in prefs:
        if dim >= p and dim % p == 0:
            return p, dim
    if dim < align:
        return dim, dim
    if dim <= prefs[0]:
        t = _round_up(dim, align)
        return t, t
    best_t, best_pad = None, None
    for p in prefs:
        pad = _round_up(dim, p)
        if best_pad is None or pad < best_pad or (pad == best_pad and p > best_t):
            best_t, best_pad = p, pad
    return best_t, best_pad


def _bf16_eup_ok():
    """bf16 exp/elementwise only pays off on chips with a bf16 VPU/EUP (v6e/v7x)."""
    try:
        kind = jax.devices()[0].device_kind.lower()
    except Exception:
        return False
    return ("v6" in kind) or ("v7" in kind)


# ---------------------------------------------------------------------------
# Tiled linear:  y = x @ w_t + b      x:(M,K)  w_t:(K,N)  b:(1,N)  y:(M,N)
# ---------------------------------------------------------------------------
def _linear_kernel(x_ref, w_ref, b_ref, o_ref, acc_ref):
    k = pl.program_id(2)

    @pl.when(k == 0)
    def _init():
        acc_ref[...] = jnp.zeros_like(acc_ref)

    acc_ref[...] += jnp.dot(x_ref[...], w_ref[...],
                            preferred_element_type=jnp.float32)

    @pl.when(k == pl.num_programs(2) - 1)
    def _finalize():
        o_ref[...] = (acc_ref[...] + b_ref[...].astype(jnp.float32)
                      ).astype(o_ref.dtype)


def _linear(x, w_t, b, *, out_dtype):
    M, K = x.shape
    K2, N = w_t.shape
    assert K == K2
    # Big tiles -> fewer panel re-reads (HBM-bound otherwise); pad ragged dims.
    tm, M_pad = _tile_and_pad(M, (512, 256, 128), 8)
    tn, N_pad = _tile_and_pad(N, (512, 256, 128), 128)
    tk, K_pad = _tile_and_pad(K, (1024, 512, 256, 128), 128)

    if M_pad != M or K_pad != K:
        x = jnp.pad(x, ((0, M_pad - M), (0, K_pad - K)))
    if K_pad != K or N_pad != N:
        w_t = jnp.pad(w_t, ((0, K_pad - K), (0, N_pad - N)))
    if N_pad != N:
        b = jnp.pad(b, ((0, 0), (0, N_pad - N)))

    grid = (M_pad // tm, N_pad // tn, K_pad // tk)
    out = pl.pallas_call(
        _linear_kernel,
        out_shape=jax.ShapeDtypeStruct((M_pad, N_pad), out_dtype),
        grid_spec=pltpu.PrefetchScalarGridSpec(
            num_scalar_prefetch=0,
            grid=grid,
            in_specs=[
                pl.BlockSpec((tm, tk), lambda i, j, k: (i, k)),   # x tile
                pl.BlockSpec((tk, tn), lambda i, j, k: (k, j)),   # w_t tile
                pl.BlockSpec((1, tn), lambda i, j, k: (0, j)),    # bias tile
            ],
            out_specs=pl.BlockSpec((tm, tn), lambda i, j, k: (i, j)),
            scratch_shapes=[pltpu.VMEM((tm, tn), jnp.float32)],
        ),
        compiler_params=pltpu.CompilerParams(
            dimension_semantics=("parallel", "parallel", "arbitrary"),
            vmem_limit_bytes=_VMEM_LIMIT),
    )(x, w_t, b)

    if M_pad != M or N_pad != N:
        out = out[:M, :N]
    return out


# ---------------------------------------------------------------------------
# Flash attention kernel body (shared by the fused and head-split wrappers)
# ---------------------------------------------------------------------------
def _flash_kernel(q_ref, k_ref, v_ref, o_ref, m_ref, l_ref, acc_ref, *,
                  scale, causal, block_q, block_kv, kv_len, kv_len_padded,
                  exp_dtype, approx_recip):
    qi = pl.program_id(1)
    ki = pl.program_id(2)

    @pl.when(ki == 0)
    def _init():
        m_ref[...] = jnp.full_like(m_ref, -jnp.inf)
        l_ref[...] = jnp.zeros_like(l_ref)
        acc_ref[...] = jnp.zeros_like(acc_ref)

    def _tile(apply_causal_mask):
        # Fold 1/sqrt(d_head) into the (tq, Dh) q tile.
        q = q_ref[0] * scale
        k = k_ref[0]
        s = lax.dot_general(q, k,
                            dimension_numbers=(((1,), (1,)), ((), ())),
                            preferred_element_type=jnp.float32)   # (tq, tkv)

        if kv_len_padded != kv_len:   # mask zero-padded key positions (static gate)
            col = ki * block_kv + lax.broadcasted_iota(
                jnp.int32, (block_q, block_kv), 1)
            s = jnp.where(col >= kv_len, _MASK_VALUE, s)

        if apply_causal_mask:         # only built for diagonal-crossing tiles
            row = qi * block_q + lax.broadcasted_iota(
                jnp.int32, (block_q, block_kv), 0)
            col = ki * block_kv + lax.broadcasted_iota(
                jnp.int32, (block_q, block_kv), 1)
            s = jnp.where(col > row, _MASK_VALUE, s)

        m_prev = m_ref[...]
        m_new = jnp.maximum(m_prev, jnp.max(s, axis=-1, keepdims=True))
        alpha = jnp.exp(m_prev - m_new)
        # exp in bf16 on v6e/v7x (EUP relief); l-sum and acc stay f32.
        p = jnp.exp((s - m_new).astype(exp_dtype))
        l_ref[...] = alpha * l_ref[...] + jnp.sum(
            p, axis=-1, keepdims=True, dtype=jnp.float32)
        acc_ref[...] = alpha * acc_ref[...] + lax.dot_general(
            p.astype(v_ref.dtype), v_ref[0],
            dimension_numbers=(((1,), (0,)), ((), ())),
            preferred_element_type=jnp.float32)
        m_ref[...] = m_new

    if causal:
        first_row = qi * block_q
        last_row = first_row + block_q - 1
        first_col = ki * block_kv
        last_col = first_col + block_kv - 1
        # Interior tiles (entirely at/below the diagonal): no mask work at all.
        pl.when(last_col <= first_row)(lambda: _tile(False))
        # Diagonal-crossing tiles: build + apply the causal mask.
        pl.when(jnp.logical_and(last_col > first_row, first_col <= last_row))(
            lambda: _tile(True))
        # Tiles entirely above the diagonal: neither branch fires; the clamped
        # kv index_map below means their K/V DMAs are elided as well.
    else:
        _tile(False)

    @pl.when(ki == pl.num_programs(2) - 1)
    def _finalize():
        l = l_ref[...]
        inv = pl.reciprocal(l, approx=True) if approx_recip else 1.0 / l
        o_ref[0] = (acc_ref[...] * inv).astype(o_ref.dtype)


def _make_kv_block_map(causal, block_q, block_kv):
    if causal:
        # Clamp to the diagonal block: above-diagonal grid steps revisit the
        # already-resident tile, so Pallas skips the K/V DMA for them.
        return lambda qi, ki: jnp.minimum(ki, (qi * block_q + block_q - 1) // block_kv)
    return lambda qi, ki: ki


# ---------------------------------------------------------------------------
# Flash attention, head-split path:  q,k,v : (B*H, S, Dh)  ->  (B*H, S, Dh)
# ---------------------------------------------------------------------------
def _flash_attention(q, k, v, *, scale, causal, compute_dtype):
    BH, S, Dh = q.shape
    Dh_pad = 128 if Dh < 128 else Dh            # lane-dense stores / MXU columns
    block, S_pad = _tile_and_pad(S, (512, 256, 128), 8)
    block_q = block_kv = block
    if S_pad != S or Dh_pad != Dh:
        pad = ((0, 0), (0, S_pad - S), (0, Dh_pad - Dh))
        q, k, v = jnp.pad(q, pad), jnp.pad(k, pad), jnp.pad(v, pad)

    kv_block = _make_kv_block_map(causal, block_q, block_kv)
    use_bf16 = (jnp.dtype(compute_dtype) == jnp.bfloat16)
    exp_dtype = jnp.bfloat16 if (use_bf16 and _bf16_eup_ok()) else jnp.float32

    kernel = functools.partial(
        _flash_kernel, scale=scale, causal=causal,
        block_q=block_q, block_kv=block_kv, kv_len=S, kv_len_padded=S_pad,
        exp_dtype=exp_dtype, approx_recip=use_bf16)

    grid = (BH, S_pad // block_q, S_pad // block_kv)
    out = pl.pallas_call(
        kernel,
        out_shape=jax.ShapeDtypeStruct((BH, S_pad, Dh_pad), q.dtype),
        grid_spec=pltpu.PrefetchScalarGridSpec(
            num_scalar_prefetch=0,
            grid=grid,
            in_specs=[
                pl.BlockSpec((1, block_q, Dh_pad),
                             lambda b, qi, ki: (b, qi, 0)),
                pl.BlockSpec((1, block_kv, Dh_pad),
                             lambda b, qi, ki: (b, kv_block(qi, ki), 0)),
                pl.BlockSpec((1, block_kv, Dh_pad),
                             lambda b, qi, ki: (b, kv_block(qi, ki), 0)),
            ],
            out_specs=pl.BlockSpec((1, block_q, Dh_pad),
                                   lambda b, qi, ki: (b, qi, 0)),
            scratch_shapes=[
                pltpu.VMEM((block_q, 1), jnp.float32),     # running max m
                pltpu.VMEM((block_q, 1), jnp.float32),     # running sum l
                pltpu.VMEM((block_q, Dh_pad), jnp.float32),  # f32 accumulator
            ],
        ),
        compiler_params=pltpu.CompilerParams(
            dimension_semantics=("parallel", "parallel", "arbitrary"),
            vmem_limit_bytes=_VMEM_LIMIT),
    )(q, k, v)

    if S_pad != S or Dh_pad != Dh:
        out = out[:, :S, :Dh]
    return out


# ---------------------------------------------------------------------------
# Flash attention, fused-head path (d_head % 128 == 0):
#   reads q/k/v straight out of qkv:(B,S,3E), writes (B,S,E) lane-dense.
# ---------------------------------------------------------------------------
def _flash_attention_fused(qkv, *, n_heads, d_head, scale, causal, compute_dtype):
    B, S, threeE = qkv.shape
    E = threeE // 3
    H = n_heads
    assert d_head % 128 == 0 and E == H * d_head

    block, S_pad = _tile_and_pad(S, (512, 256, 128), 8)
    block_q = block_kv = block
    if S_pad != S:
        qkv = jnp.pad(qkv, ((0, 0), (0, S_pad - S), (0, 0)))

    kv_block = _make_kv_block_map(causal, block_q, block_kv)
    use_bf16 = (jnp.dtype(compute_dtype) == jnp.bfloat16)
    exp_dtype = jnp.bfloat16 if (use_bf16 and _bf16_eup_ok()) else jnp.float32

    kernel = functools.partial(
        _flash_kernel, scale=scale, causal=causal,
        block_q=block_q, block_kv=block_kv, kv_len=S, kv_len_padded=S_pad,
        exp_dtype=exp_dtype, approx_recip=use_bf16)

    grid = (B * H, S_pad // block_q, S_pad // block_kv)
    out = pl.pallas_call(
        kernel,
        out_shape=jax.ShapeDtypeStruct((B, S_pad, E), qkv.dtype),
        grid_spec=pltpu.PrefetchScalarGridSpec(
            num_scalar_prefetch=0,
            grid=grid,
            in_specs=[
                # q for head h=b%H lives at column block h of qkv
                pl.BlockSpec((1, block_q, d_head),
                             lambda b, qi, ki: (b // H, qi, b % H)),
                # k at column block H + h
                pl.BlockSpec((1, block_kv, d_head),
                             lambda b, qi, ki: (b // H, kv_block(qi, ki), H + b % H)),
                # v at column block 2H + h
                pl.BlockSpec((1, block_kv, d_head),
                             lambda b, qi, ki: (b // H, kv_block(qi, ki), 2 * H + b % H)),
            ],
            out_specs=pl.BlockSpec((1, block_q, d_head),
                                   lambda b, qi, ki: (b // H, qi, b % H)),
            scratch_shapes=[
                pltpu.VMEM((block_q, 1), jnp.float32),
                pltpu.VMEM((block_q, 1), jnp.float32),
                pltpu.VMEM((block_q, d_head), jnp.float32),
            ],
        ),
        compiler_params=pltpu.CompilerParams(
            dimension_semantics=("parallel", "parallel", "arbitrary"),
            vmem_limit_bytes=_VMEM_LIMIT),
    )(qkv, qkv, qkv)

    if S_pad != S:
        out = out[:, :S, :]
    return out


# ---------------------------------------------------------------------------
# Full SelfAttention.forward
# ---------------------------------------------------------------------------
def self_attention(x, w_in, b_in, w_out, b_out, *, n_heads, causal_mask=False,
                   compute_dtype=jnp.bfloat16):
    """x: (B, S, E) f32; weights in PyTorch-Linear layout (out, in); returns (B, S, E)."""
    B, S, E = x.shape
    assert E % n_heads == 0
    d_head = E // n_heads
    cd = jnp.dtype(compute_dtype)
    scale = 1.0 / math.sqrt(d_head)

    # One-time XLA-level prep: cast MXU operands and pre-transpose weights so
    # the kernels contract over the weight's leading (sublane) dim.
    x2d = x.reshape(B * S, E).astype(cd)
    w_in_t = w_in.T.astype(cd)                        # (E, 3E)
    w_out_t = w_out.T.astype(cd)                      # (E, E)
    b_in2 = b_in.reshape(1, 3 * E).astype(jnp.float32)
    b_out2 = b_out.reshape(1, E).astype(jnp.float32)

    # in_proj: qkv = x @ W_in.T + b_in
    qkv2d = _linear(x2d, w_in_t, b_in2, out_dtype=cd)  # (B*S, 3E)

    if d_head % 128 == 0:
        # Fused-head path: no head split/merge transposes, no extra HBM passes.
        qkv = qkv2d.reshape(B, S, 3 * E)
        ctx = _flash_attention_fused(qkv, n_heads=n_heads, d_head=d_head,
                                     scale=scale, causal=causal_mask,
                                     compute_dtype=cd)          # (B, S, E)
        ctx2d = ctx.reshape(B * S, E)
    else:
        # Head-split path (small heads padded to a 128-wide lane dim inside).
        qkv = qkv2d.reshape(B, S, 3, n_heads, d_head)

        def to_heads(t):                               # (B,S,H,Dh) -> (B*H,S,Dh)
            return t.transpose(0, 2, 1, 3).reshape(B * n_heads, S, d_head)

        q = to_heads(qkv[:, :, 0])
        k = to_heads(qkv[:, :, 1])
        v = to_heads(qkv[:, :, 2])
        ctx = _flash_attention(q, k, v, scale=scale, causal=causal_mask,
                               compute_dtype=cd)                 # (B*H, S, Dh)
        ctx2d = ctx.reshape(B, n_heads, S, d_head).transpose(0, 2, 1, 3)
        ctx2d = ctx2d.reshape(B * S, E)

    out = _linear(ctx2d, w_out_t, b_out2, out_dtype=x.dtype)     # (B*S, E)
    return out.reshape(B, S, E)


# ---------------------------------------------------------------------------
# Pure-JAX reference mirroring the (intended) PyTorch forward
# ---------------------------------------------------------------------------
def _reference(x, w_in, b_in, w_out, b_out, n_heads, causal_mask):
    B, S, E = x.shape
    d_head = E // n_heads
    qkv = x @ w_in.T + b_in                           # (B, S, 3E)
    q, k, v = jnp.split(qkv, 3, axis=-1)

    def heads(t):                                     # (B,S,E) -> (B,H,S,Dh)
        return t.reshape(B, S, n_heads, d_head).transpose(0, 2, 1, 3)

    q, k, v = heads(q), heads(k), heads(v)
    w = jnp.einsum("bhqd,bhkd->bhqk", q, k)
    if causal_mask:
        mask = jnp.triu(jnp.ones((S, S), dtype=bool), 1)
        w = jnp.where(mask[None, None], -jnp.inf, w)
    w = w / math.sqrt(d_head)
    w = jax.nn.softmax(w, axis=-1)
    out = jnp.einsum("bhqk,bhkd->bhqd", w, v)
    out = out.transpose(0, 2, 1, 3).reshape(B, S, E)
    return out @ w_out.T + b_out


if __name__ == "__main__":
    def rel_err(a, b):
        a = a.astype(jnp.float32)
        b = b.astype(jnp.float32)
        return float(jnp.linalg.norm(a - b) / (jnp.linalg.norm(b) + 1e-12))

    key = jax.random.PRNGKey(0)

    # (B, S, E, H, run_f32_path)
    configs = [
        (2, 8, 32, 4, True),      # tiny SD-like shapes; head-split path (d_head=8)
        (1, 256, 256, 2, True),   # fused-head path (d_head=128), no transposes
        (2, 12, 32, 4, False),    # ragged seq: exercises padding + kv masking
    ]

    ok = True
    for (B, S, E, H, run_f32) in configs:
        key, kx, k1, k2, k3, k4 = jax.random.split(key, 6)
        x = jax.random.normal(kx, (B, S, E), dtype=jnp.float32)
        w_in = jax.random.normal(k1, (3 * E, E), dtype=jnp.float32) * 0.05
        b_in = jax.random.normal(k2, (3 * E,), dtype=jnp.float32) * 0.05
        w_out = jax.random.normal(k3, (E, E), dtype=jnp.float32) * 0.05
        b_out = jax.random.normal(k4, (E,), dtype=jnp.float32) * 0.05

        for causal in (False, True):
            y_ref = _reference(x, w_in, b_in, w_out, b_out, H, causal)

            if run_f32:
                # f32 compute path: tight check of the flash algorithm itself.
                y_f32 = jax.block_until_ready(
                    self_attention(x, w_in, b_in, w_out, b_out, n_heads=H,
                                   causal_mask=causal,
                                   compute_dtype=jnp.float32))
                ok = ok and (rel_err(y_f32, y_ref) < 1e-4)

            # bf16 MXU-input fast path (f32 accumulation): loose tolerance.
            y_bf16 = jax.block_until_ready(
                self_attention(x, w_in, b_in, w_out, b_out, n_heads=H,
                               causal_mask=causal,
                               compute_dtype=jnp.bfloat16))
            ok = ok and (rel_err(y_bf16, y_ref) < 3e-2)

    print("KERNEL_OK" if ok else "MISMATCH")
</pallas_src>

<mosaic_0001>
module attributes {stable_mosaic.version = 11 : i64} {
  func.func @_linear_kernel(%arg0: i32, %arg1: i32, %arg2: i32, %arg3: memref<16x32xf32, #tpu.memory_space<vmem>>, %arg4: memref<32x96xf32, #tpu.memory_space<vmem>>, %arg5: memref<1x96xf32, #tpu.memory_space<vmem>>, %arg6: memref<16x96xf32, #tpu.memory_space<vmem>>, %arg7: memref<16x96xf32, #tpu.memory_space<vmem>>) attributes {dimension_semantics = [#tpu.dimension_semantics<parallel>, #tpu.dimension_semantics<parallel>, #tpu.dimension_semantics<arbitrary>], iteration_bounds = array<i64: 1, 1, 1>, scalar_prefetch = 0 : i64, scratch_operands = 1 : i64, tpu.core_type = #tpu.core_type<tc>, window_params = [{transform_indices = @transform_0, window_bounds = array<i64: 16, 32>}, {transform_indices = @transform_1, window_bounds = array<i64: 32, 96>}, {transform_indices = @transform_2, window_bounds = array<i64: 1, 96>}, {transform_indices = @transform_3, window_bounds = array<i64: 16, 96>}]} {
    %c0_i32 = arith.constant 0 : i32
    %0 = arith.cmpi eq, %arg2, %c0_i32 : i32
    %1 = arith.extui %0 : i1 to i32
    %c0_i32_0 = arith.constant 0 : i32
    %2 = arith.cmpi ne, %1, %c0_i32_0 : i32
    scf.if %2 {
      %cst_10 = arith.constant 0.000000e+00 : f32
      %12 = vector.broadcast %cst_10 : f32 to vector<16x96xf32>
      %c0_11 = arith.constant 0 : index
      %c0_12 = arith.constant 0 : index
      %13 = vector.load %arg7[%c0_11, %c0_12] : memref<16x96xf32, #tpu.memory_space<vmem>>, vector<16x96xf32>
      tpu.vector_store %arg7[%c0_11, %c0_12], %12 {strides = array<i32>} : memref<16x96xf32, #tpu.memory_space<vmem>>, vector<16x96xf32>,
    } else {
    }
    %c0 = arith.constant 0 : index
    %c0_1 = arith.constant 0 : index
    %3 = vector.load %arg7[%c0, %c0_1] : memref<16x96xf32, #tpu.memory_space<vmem>>, vector<16x96xf32>
    %c0_2 = arith.constant 0 : index
    %c0_3 = arith.constant 0 : index
    %4 = vector.load %arg3[%c0_2, %c0_3] : memref<16x32xf32, #tpu.memory_space<vmem>>, vector<16x32xf32>
    %c0_4 = arith.constant 0 : index
    %c0_5 = arith.constant 0 : index
    %5 = vector.load %arg4[%c0_4, %c0_5] : memref<32x96xf32, #tpu.memory_space<vmem>>, vector<32x96xf32>
    %cst = arith.constant dense<0.000000e+00> : vector<16x96xf32>
    %6 = tpu.matmul %4, %5, %cst {dimension_numbers = #tpu.dot_dimension_numbers<[1], [0], [0], [1], [0, 0, 1, 1], [], []>} : vector<16x32xf32>, vector<32x96xf32>, vector<16x96xf32> -> vector<16x96xf32>
    %7 = arith.addf %3, %6 : vector<16x96xf32>
    %c0_6 = arith.constant 0 : index
    %c0_7 = arith.constant 0 : index
    %8 = vector.load %arg7[%c0_6, %c0_7] : memref<16x96xf32, #tpu.memory_space<vmem>>, vector<16x96xf32>
    tpu.vector_store %arg7[%c0_6, %c0_7], %7 {strides = array<i32>} : memref<16x96xf32, #tpu.memory_space<vmem>>, vector<16x96xf32>,
    %c0_i32_8 = arith.constant 0 : i32
    %9 = arith.cmpi eq, %arg2, %c0_i32_8 : i32
    %10 = arith.extui %9 : i1 to i32
    %c0_i32_9 = arith.constant 0 : i32
    %11 = arith.cmpi ne, %10, %c0_i32_9 : i32
    scf.if %11 {
      %c0_10 = arith.constant 0 : index
      %c0_11 = arith.constant 0 : index
      %12 = vector.load %arg7[%c0_10, %c0_11] : memref<16x96xf32, #tpu.memory_space<vmem>>, vector<16x96xf32>
      %c0_12 = arith.constant 0 : index
      %c0_13 = arith.constant 0 : index
      %13 = vector.load %arg5[%c0_12, %c0_13] : memref<1x96xf32, #tpu.memory_space<vmem>>, vector<1x96xf32>
      %14 = vector.broadcast %13 : vector<1x96xf32> to vector<16x96xf32>
      %15 = arith.addf %12, %14 : vector<16x96xf32>
      %c0_14 = arith.constant 0 : index
      %c0_15 = arith.constant 0 : index
      %16 = vector.load %arg6[%c0_14, %c0_15] : memref<16x96xf32, #tpu.memory_space<vmem>>, vector<16x96xf32>
      tpu.vector_store %arg6[%c0_14, %c0_15], %15 {strides = array<i32>} : memref<16x96xf32, #tpu.memory_space<vmem>>, vector<16x96xf32>,
    } else {
    }
    return
  }
  func.func @transform_0(%arg0: i32, %arg1: i32, %arg2: i32) -> (i32, i32) {
    %c0_i32 = arith.constant 0 : i32
    return %arg0, %arg2 : i32, i32
  }
  func.func @transform_1(%arg0: i32, %arg1: i32, %arg2: i32) -> (i32, i32) {
    %c0_i32 = arith.constant 0 : i32
    return %arg2, %arg1 : i32, i32
  }
  func.func @transform_2(%arg0: i32, %arg1: i32, %arg2: i32) -> (i32, i32) {
    %c0_i32 = arith.constant 0 : i32
    %c0_i32_0 = arith.constant 0 : i32
    return %c0_i32, %arg1 : i32, i32
  }
  func.func @transform_3(%arg0: i32, %arg1: i32, %arg2: i32) -> (i32, i32) {
    %c0_i32 = arith.constant 0 : i32
    return %arg0, %arg1 : i32, i32
  }
}

</mosaic_0001>

<bundles_post_ra>
// kernel: tpu_custom_call.1
= control target key start
LH: loop header
LB: loop body
LE: loop exit
PB: predicated region body
PF: predicated region fallthrough
CT: control target
= control target key end

     0   :  { %8 = vsyncpa [#allocation4], 0  ;;  %s365_s0 = inlined_call_operand.hbm [shape: f32[16,32], index: 0, kind: input, shape index: {}]   ;;  %s366_s1 = inlined_call_operand.hbm [shape: f32[32,96], index: 1, kind: input, shape index: {}]   ;;  %s367_s2 = inlined_call_operand.vmem [shape: f32[1,96], index: 2, kind: input, shape index: {}]   ;;  %s368_s3 = inlined_call_operand.hbm [shape: f32[16,96], index: 3, kind: output, shape index: {}]  }
   0x1   :  { %9 = vsyncpa [#allocation7], 0 }
   0x2   :  { %10 = vsyncpa [#allocation5], 0  ;;  %s285_s12 = smov [#allocation3]   ;;  %s213_s16 = scalar_lea.hbm %s365_s0, 256 }
   0x3   :  { %s16_s13 = sshll.u32 %s285_s12, 4  ;;  %p214_p0 = scmp.ne.s32.totalorder %s365_s0, %s213_s16  ;;  %s17_s13 = int_to_ptr.vmem [resolvable:$true] %s16_s13 }
   0x4   :  { %p217_p1 = scmp.lt.u32.totalorder %s213_s16, %s365_s0 }
   0x6   :  { %p219_p2 = pnand %p217_p1, %p214_p0 }
   0x8   :  { %222 = shalt.err (!%p219_p2)
}
   0x9   :  { %s223_s21 = scalar_lea.vmem %s17_s13, 256  ;;  %p228_p4 = scmp.lt.s32.totalorder %s17_s13, %s17_s13 }
   0xa   :  { %p224_p3 = scmp.ne.s32.totalorder %s17_s13, %s223_s21  ;;  %p229_p5 = scmp.lt.s32.totalorder %s223_s21, %s223_s21 }
   0xc   :  { %p230_p6 = por %p229_p5, %p228_p4 }
   0xe   :  { %p231_p7 = pnand %p230_p6, %p224_p3 }
  0x10   :  { %234 = shalt.err (!%p231_p7)
}
  0x11   :  { %s286_s22 = smov 128   ;;  %s287_s23 = smov 8  }
  0x12   :  { %22 = dma.hbm_to_vmem [thread:$0]  %s365_s0, 256, %s17_s13, [#allocation4], %s286_s22, %s286_s22, %s287_s23  }
  0x13   :  { %s288_s26 = smov [#allocation6]   ;;  %s235_s30 = scalar_lea.hbm %s366_s1, 512 }
  0x14   :  { %s28_s27 = sshll.u32 %s288_s26, 4  ;;  %p236_p8 = scmp.ne.s32.totalorder %s366_s1, %s235_s30  ;;  %s29_s27 = int_to_ptr.vmem [resolvable:$true] %s28_s27 }
  0x15   :  { %p239_p9 = scmp.lt.u32.totalorder %s235_s30, %s366_s1 }
  0x17   :  { %p241_p10 = pnand %p239_p9, %p236_p8 }
  0x19   :  { %244 = shalt.err (!%p241_p10)
}
  0x1a   :  { %s245_s8 = scalar_lea.vmem %s29_s27, 512  ;;  %p250_p12 = scmp.lt.s32.totalorder %s29_s27, %s29_s27 }
  0x1b   :  { %p246_p11 = scmp.ne.s32.totalorder %s29_s27, %s245_s8  ;;  %p251_p13 = scmp.lt.s32.totalorder %s245_s8, %s245_s8 }
  0x1d   :  { %p252_p0 = por %p251_p13, %p250_p12 }
  0x1f   :  { %p253_p1 = pnand %p252_p0, %p246_p11 }
  0x21   :  { %256 = shalt.err (!%p253_p1)
}
  0x22   :  { %34 = dma.hbm_to_vmem [thread:$0]  %s366_s1, 512, %s29_s27, [#allocation7], %s286_s22, %s286_s22, %s287_s23  }
  0x23   :  { %279 = dma.done.wait [#allocation4], 256  }
  0x24   :  { %280 = vsyncadd [#allocation4], 4294967040 }
  0x25   :  { %281 = dma.done.wait [#allocation7], 512  }
  0x26   :  { %282 = vsyncadd [#allocation7], 4294966784  ;;  %vm47_vm0 = vcmask 785408   ;;  %v289_v0 = vmov 0.0   ;;  %vm58_vm1 = vcmask 261120   ;;  %v54_v1 = vld [vmem:[#allocation6] sm:$0xff] }
  0x27   :  { %49 = vst.msk [vmem:[#allocation2 + $0x8] sm:$0xff] %vm47_vm0, %v289_v0  ;;  %48 = vst.msk [vmem:[#allocation2] sm:$0xff] %vm47_vm0, %v289_v0  ;;  %v55_v2 = vld [vmem:[#allocation6 + $0x8] sm:$0xff]  ;;  %v56_v3 = vld [vmem:[#allocation6 + $0x10] sm:$0xff]  ;;  %s290_s11 = smov [#allocation8]  }
  0x28   :  { %v199_v4 = vpack.c.bf16 %v55_v2, %v54_v1  ;;  %v57_v5 = vld [vmem:[#allocation6 + $0x18] sm:$0xff]  ;;  %v52_v6 = vld [vmem:[#allocation3] sm:$0xff]  ;;  %v181_v15 = vld [vmem:[%s367_s2] ss:$0 sm:$0xff]  ;;  %s166_s12 = sshll.u32 %s290_s11, 4  ;;  %s167_s12 = int_to_ptr.vmem [resolvable:$true] %s166_s12 }
  0x29   :  { %v203_v7 = vpack.c.bf16 %v57_v5, %v56_v3  ;;  %196 = vmatprep.mubr.msk.f32.mxu0 %vm58_vm1, %v52_v6  ;;  %v53_v8 = vld [vmem:[#allocation3 + $0x8] sm:$0xff]  ;;  %s257_s13 = scalar_lea.vmem %s167_s12, 256  ;;  %p262_p3 = scmp.lt.s32.totalorder %s167_s12, %s167_s12 }
  0x2a   :  { %200 = vmatprep.subr.bf16.mxu0 %v199_v4  ;;  %p258_p2 = scmp.ne.s32.totalorder %s167_s12, %s257_s13  ;;  %p263_p4 = scmp.lt.s32.totalorder %s257_s13, %s257_s13 }
  0x2b   :  { %202 = vmatpush3.bf16.msra.mxu0 %v199_v4 }
  0x2c   :  { %204 = vmatprep.subr.bf16.mxu0 %v203_v7  ;;  %p264_p5 = por %p263_p4, %p262_p3 }
  0x2e   :  { %v51_v9 = vld [vmem:[#allocation2 + $0x8] sm:$0xff]  ;;  %v50_v10 = vld [vmem:[#allocation2] sm:$0xff]  ;;  %p265_p6 = pnand %p264_p5, %p258_p2 }
  0x2f   :  { %206 = vmatpush3.bf16.msra.mxu0 %v203_v7 }
  0x32   :  { %197 = vmatmul.mubr.msk.f32.vlgmr.msra.gmra.mrb[0].mxu0 %vm58_vm1, %v53_v8 }
 0x105   :  { %v198_v11 = vpop.f32.mrb[0].mxu0 }
 0x106   :  { %v141_v12 = vadd.f32 %v198_v11, %v51_v9  ;;  %v131_v13 = vpop.f32.mrb[1].mxu0 }
 0x107   :  { %v140_v14 = vadd.f32 %v131_v13, %v50_v10 }
 0x108   :  { %144 = vst.msk [vmem:[#allocation2 + $0x8] sm:$0xff] %vm47_vm0, %v141_v12 }
 0x109   :  { %143 = vst.msk [vmem:[#allocation2] sm:$0xff] %vm47_vm0, %v140_v14 }
 0x10f   :  { %v149_v16 = vld [vmem:[#allocation2 + $0x8] sm:$0xff] }
 0x110   :  { %v148_v17 = vld [vmem:[#allocation2] sm:$0xff]  ;;  %v158_v18 = vadd.f32 %v181_v15, %v149_v16 }
 0x111   :  { %v157_v19 = vadd.f32 %v181_v15, %v148_v17 }
 0x112   :  { %160 = vst.msk [vmem:[#allocation8 + $0x8] sm:$0xff] %vm47_vm0, %v158_v18 }
 0x113   :  { %159 = vst.msk [vmem:[#allocation8] sm:$0xff] %vm47_vm0, %v157_v19 }
 0x114   :  { %268 = shalt.err (!%p265_p6)
}
 0x115   :  { %s269_s15 = scalar_lea.hbm %s368_s3, 256 }
 0x116   :  { %p270_p7 = scmp.ne.s32.totalorder %s368_s3, %s269_s15  ;;  %p273_p8 = scmp.lt.u32.totalorder %s269_s15, %s368_s3 }
 0x118   :  { %p275_p9 = pnand %p273_p8, %p270_p7 }
 0x11a   :  { %278 = shalt.err (!%p275_p9)
}
 0x11b   :  { %172 = dma.vmem_to_hbm [thread:$0]  %s167_s12, 256, %s368_s3, [#allocation5], %s286_s22, %s286_s22, %s287_s23  }
 0x11c   :  { %283 = dma.done.wait [#allocation5], 256  }
 0x11d   :  { %284 = vsyncadd [#allocation5], 4294967040 }
 0x11e   :  { %176 = vsyncpa [#allocation4], 1 }
 0x11f   :  { %177 = vsyncpa [#allocation7], 1 }
 0x120   :  { %178 = vsyncpa [#allocation5], 1 }

</bundles_post_ra>
